<compile_context>
chip_gen: v7x
topology: tpu7x:2x2x1
jax: 0.10.0
libtpu: 0.0.40
codegen_flags: <defaults>
</compile_context>

<pallas_src>
import functools

import numpy as np
import jax
import jax.numpy as jnp
from jax.experimental import pallas as pl
from jax.experimental.pallas import tpu as pltpu


# --------------------------------------------------------------------------
# helpers
# --------------------------------------------------------------------------
def _pick_tile(dim, target, quantum):
    """Largest tile <= target that divides dim and is a multiple of quantum
    (falls back to the full dim, which is always a legal full-extent block)."""
    if dim <= target:
        return dim
    start = target - (target % quantum)
    for t in range(start, 0, -quantum):
        if dim % t == 0:
            return t
    return dim


def _vmem_budget_bytes():
    """Generation-aware VMEM budget (75% of physical; v7x floor fallback = 64 MiB)."""
    try:
        cap = int(pltpu.get_tpu_info().vmem_capacity_bytes)
    except Exception:
        cap = 64 << 20
    return max(16 << 20, (cap * 3) // 4)


def _auto_row_tile(h, w, h16, cout, out_bytes, budget):
    """Pick the head row tile from the VMEM budget:
    2x output block (double buffer) + bw block (stays resident) + Mh16 tile + slack."""
    fixed = 2 * h16 * cout * w * 4 + (2 << 20)
    per_row = 2 * cout * w * out_bytes + 2 * h16 * 2
    th_cap = max(8, (budget - fixed) // per_row)
    if h <= th_cap:
        return h
    return _pick_tile(h, int(th_cap), 8)


def bilinear_matrix_np(out_size, in_size):
    """Dense 1-D bilinear interpolation operator matching
    F.interpolate(mode='bilinear', align_corners=True)."""
    if out_size == 1:
        src = np.zeros((1,), dtype=np.float64)
    else:
        src = np.arange(out_size, dtype=np.float64) * (in_size - 1) / (out_size - 1)
    i0 = np.clip(np.floor(src).astype(np.int64), 0, in_size - 1)
    i1 = np.minimum(i0 + 1, in_size - 1)
    w1 = src - i0
    w0 = 1.0 - w1
    m = np.zeros((out_size, in_size), dtype=np.float64)
    m[np.arange(out_size), i0] += w0
    m[np.arange(out_size), i1] += w1
    return m


def make_interp_matrices(h, w, h16, w16, h32, w32, cout):
    """Separable interpolation operators (hoisted, built once on the host).
    mh2bd is the x2 H-step operator replicated block-diagonally over channels so the
    head prologue can fold all channels into a single MXU call."""
    mh2 = bilinear_matrix_np(h16, h32)
    return {
        "mh2":   jnp.asarray(mh2, jnp.float32),                               # (H16, H32)
        "mh2bd": jnp.asarray(np.kron(np.eye(cout), mh2), jnp.float32),        # (C*H16, C*H32)
        "mw2t":  jnp.asarray(bilinear_matrix_np(w16, w32).T, jnp.float32),    # (W32, W16)
        "mh16":  jnp.asarray(bilinear_matrix_np(h, h16), jnp.float32),        # (H,   H16)
        "mw16t": jnp.asarray(bilinear_matrix_np(w, w16).T, jnp.float32),      # (W16, W)
    }


# --------------------------------------------------------------------------
# Fused backbone stage: tiled matmul + bias + relu, with the 1x1 classifier fused
# into the epilogue (no feature-map transpose, no separate classifier call).
#   features = relu(X @ Wb + bb)            (bf16 out, fed to the next stage)
#   pred     = features @ Wc + bc           (f32 logits for the FCN head)
# grid = (M tiles, K tiles); K is the reduction axis (last, "arbitrary") with an f32
# VMEM accumulator and pl.when init/finalize.
# --------------------------------------------------------------------------
def _stage_kernel(x_ref, w_ref, b_ref, wc_ref, bc_ref, f_ref, p_ref, acc_ref):
    @pl.when(pl.program_id(1) == 0)
    def _():
        acc_ref[...] = jnp.zeros_like(acc_ref)

    acc_ref[...] += jnp.dot(x_ref[...], w_ref[...],
                            preferred_element_type=jnp.float32)

    @pl.when(pl.program_id(1) == pl.num_programs(1) - 1)
    def _():
        y = jnp.maximum(acc_ref[...] + b_ref[...], 0.0)          # f32 bias + relu
        f_ref[...] = y.astype(f_ref.dtype)                       # bf16 features
        p = jnp.dot(y.astype(wc_ref.dtype), wc_ref[...],         # fused 1x1 classifier
                    preferred_element_type=jnp.float32)
        p_ref[...] = (p + bc_ref[...]).astype(p_ref.dtype)       # f32 logits


def fused_stage(xp, wmat, bvec, wcls, bcls, *, compute_dtype=jnp.bfloat16,
                target_tm=512, target_tk=512):
    # TODO(synk): very wide layers would also want N-tiling of the weight block; the
    # synthetic backbone's N (8/16 channels) is a full-extent block.
    M, K = xp.shape
    N = wmat.shape[1]
    cout = wcls.shape[1]
    tm = _pick_tile(M, target_tm, 8)
    tk = _pick_tile(K, target_tk, 128)
    return pl.pallas_call(
        _stage_kernel,
        out_shape=(jax.ShapeDtypeStruct((M, N), compute_dtype),       # features
                   jax.ShapeDtypeStruct((M, cout), jnp.float32)),     # classifier logits
        grid=(M // tm, K // tk),
        in_specs=[
            pl.BlockSpec((tm, tk), lambda i, k: (i, k)),
            pl.BlockSpec((tk, N), lambda i, k: (k, 0)),
            pl.BlockSpec((1, N), lambda i, k: (0, 0)),
            pl.BlockSpec((N, cout), lambda i, k: (0, 0)),
            pl.BlockSpec((1, cout), lambda i, k: (0, 0)),
        ],
        out_specs=(pl.BlockSpec((tm, N), lambda i, k: (i, 0)),
                   pl.BlockSpec((tm, cout), lambda i, k: (i, 0))),
        scratch_shapes=[pltpu.VMEM((tm, N), jnp.float32)],
        compiler_params=pltpu.CompilerParams(
            dimension_semantics=("parallel", "arbitrary")),
    )(xp.astype(compute_dtype), wmat.astype(compute_dtype),
      bvec.reshape(1, -1).astype(jnp.float32),
      wcls.astype(compute_dtype), bcls.reshape(1, -1).astype(jnp.float32))


# --------------------------------------------------------------------------
# Synthetic deterministic backbone (stride-16 / stride-32 features) + fused classifiers.
# TODO(synk): the real backbone is an arbitrary external nn.Module captured via forward
# hooks (CaptureOutput); replaced by a deterministic patchify backbone.
# TODO(synk): the XLA-side patchify reshape/transpose could be folded into the matmul
# BlockSpec index_map; left in XLA since the backbone is a stand-in.
# --------------------------------------------------------------------------
def backbone_and_classify(x_nchw, params, compute_dtype=jnp.bfloat16):
    n, cin, h, w = x_nchw.shape
    h16, w16 = h // 16, w // 16
    h32, w32 = h16 // 2, w16 // 2

    p = x_nchw.reshape(n, cin, h16, 16, w16, 16)
    p = jnp.transpose(p, (0, 2, 4, 3, 5, 1)).reshape(n * h16 * w16, 16 * 16 * cin)
    f16, pred16 = fused_stage(p, params["wb16"], params["bb16"],
                              params["w16t"].T, params["b16"],
                              compute_dtype=compute_dtype)
    c16 = f16.shape[-1]
    f16_map = f16.reshape(n, h16, w16, c16)                        # bf16 NHWC features

    q = f16_map.reshape(n, h32, 2, w32, 2, c16)
    q = jnp.transpose(q, (0, 1, 3, 2, 4, 5)).reshape(n * h32 * w32, 4 * c16)
    f32, pred32 = fused_stage(q, params["wb32"], params["bb32"],
                              params["w32t"].T, params["b32"],
                              compute_dtype=compute_dtype)
    f32_map = f32.reshape(n, h32, w32, -1)
    return f16_map, f32_map, pred16, pred32                        # preds: (N*S, Cout) f32


# --------------------------------------------------------------------------
# Head prologue (once per batch element, grid=(N,), "parallel"):
#   bw[b] = (pred16[b] + up2(pred32[b])) @ Mw16^T, emitted in (h16, cout*w) layout
#   (channels folded on the lane axis) for the single-dot x16 H-step.
# All channel loops are folded into 3 MXU calls; the only per-channel work left is the
# sublane->lane relayout slab copies.
# --------------------------------------------------------------------------
def _bw_kernel(p16_ref, p32_ref, mw2t_ref, mh2bd_ref, mw16t_ref, bw_ref, *, cout, h16, w):
    cdt = mw2t_ref.dtype
    # x2 W-step, channels folded on sublanes: (cout*h32, w32) @ (w32, w16)
    u = jnp.dot(p32_ref[0], mw2t_ref[...], preferred_element_type=jnp.float32)
    # x2 H-step, channels folded via block-diagonal Mh2: (cout*h16, cout*h32) @ (cout*h32, w16)
    up = jnp.dot(mh2bd_ref[...], u.astype(cdt), preferred_element_type=jnp.float32)
    pred = p16_ref[0] + up                                          # f32, (cout*h16, w16)
    # x16 W-step, channels folded: (cout*h16, w16) @ (w16, w)
    bwf = jnp.dot(pred.astype(cdt), mw16t_ref[...], preferred_element_type=jnp.float32)
    # relayout channels from sublanes to lanes: (cout*h16, w) -> (h16, cout*w), f32
    for c in range(cout):
        bw_ref[0, :, c * w:(c + 1) * w] = bwf[c * h16:(c + 1) * h16, :]


# --------------------------------------------------------------------------
# x16 H-step (hot loop), grid=(N, row_tiles) -- both axes "parallel" (no carried state,
# bw is an input), so row tiles shard across both v7x TensorCores at batch 1.
# One dot per tile: (th, h16) @ (h16, cout*w); then cout lane-slab stores at c*w
# (lane-aligned at real sizes where w is a multiple of 128).
# --------------------------------------------------------------------------
def _hstep_kernel(mh16_ref, bw_ref, o_ref, *, cout, w, cdt):
    of = jnp.dot(mh16_ref[...], bw_ref[0].astype(cdt),              # bw kept f32; cast at the dot
                 preferred_element_type=jnp.float32)                # (th, cout*w)
    for c in range(cout):
        o_ref[0, c] = of[:, c * w:(c + 1) * w].astype(o_ref.dtype)


def fcn16_head(pred16, pred32, interp, *, n, h, w, cout, compute_dtype, out_dtype,
               head_row_tile=None):
    h16, w16 = h // 16, w // 16
    h32, w32 = h // 32, w // 32

    # tiny relayouts of the classifier logits only (a few hundred KB at real sizes);
    # the feature maps never round-trip HBM for the head.
    p16b = jnp.transpose(pred16.reshape(n, h16, w16, cout), (0, 3, 1, 2)) \
              .reshape(n, cout * h16, w16)                                   # f32
    p32b = jnp.transpose(pred32.reshape(n, h32, w32, cout), (0, 3, 1, 2)) \
              .reshape(n, cout * h32, w32).astype(compute_dtype)             # bf16 operand

    mw2t = interp["mw2t"].astype(compute_dtype)
    mh2bd = interp["mh2bd"].astype(compute_dtype)
    mw16t = interp["mw16t"].astype(compute_dtype)
    mh16 = interp["mh16"].astype(compute_dtype)

    budget = _vmem_budget_bytes()

    bw = pl.pallas_call(
        functools.partial(_bw_kernel, cout=cout, h16=h16, w=w),
        out_shape=jax.ShapeDtypeStruct((n, h16, cout * w), jnp.float32),
        grid=(n,),
        in_specs=[
            pl.BlockSpec((1, cout * h16, w16), lambda b: (b, 0, 0)),
            pl.BlockSpec((1, cout * h32, w32), lambda b: (b, 0, 0)),
            pl.BlockSpec((w32, w16), lambda b: (0, 0)),
            pl.BlockSpec((cout * h16, cout * h32), lambda b: (0, 0)),
            pl.BlockSpec((w16, w), lambda b: (0, 0)),
        ],
        out_specs=pl.BlockSpec((1, h16, cout * w), lambda b: (b, 0, 0)),
        compiler_params=pltpu.CompilerParams(
            dimension_semantics=("parallel",),
            vmem_limit_bytes=int(budget)),
    )(p16b, p32b, mw2t, mh2bd, mw16t)

    out_bytes = jnp.dtype(out_dtype).itemsize
    th = head_row_tile if head_row_tile is not None else \
        _auto_row_tile(h, w, h16, cout, out_bytes, budget)
    assert h % th == 0 and (th == h or th % 8 == 0), (h, th)
    n_ht = h // th

    head_flops = 2 * n * h * h16 * cout * w
    head_bytes = (n * h16 * cout * w * 4) + (n * cout * h * w * out_bytes) + (h * h16 * 2)

    out = pl.pallas_call(
        functools.partial(_hstep_kernel, cout=cout, w=w, cdt=compute_dtype),
        out_shape=jax.ShapeDtypeStruct((n, cout, h, w), out_dtype),
        grid=(n, n_ht),
        in_specs=[
            pl.BlockSpec((th, h16), lambda b, j: (j, 0)),
            pl.BlockSpec((1, h16, cout * w), lambda b, j: (b, 0, 0)),   # resident per batch
        ],
        out_specs=pl.BlockSpec((1, cout, th, w), lambda b, j: (b, 0, j, 0)),
        compiler_params=pltpu.CompilerParams(
            dimension_semantics=("parallel", "parallel"),
            vmem_limit_bytes=int(budget)),
        cost_estimate=pl.CostEstimate(flops=head_flops, transcendentals=0,
                                      bytes_accessed=head_bytes),
    )(mh16, bw)
    return out


# --------------------------------------------------------------------------
# FCN16 forward: NCHW in, NCHW out (same semantics as the PyTorch module)
# --------------------------------------------------------------------------
def fcn16_forward(x_nchw, params, interp, *, compute_dtype=jnp.bfloat16,
                  out_dtype=jnp.bfloat16, head_row_tile=None):
    n, _, h, w = x_nchw.shape
    cout = params["w16t"].shape[0]
    _, _, pred16, pred32 = backbone_and_classify(x_nchw, params, compute_dtype)
    return fcn16_head(pred16, pred32, interp, n=n, h=h, w=w, cout=cout,
                      compute_dtype=compute_dtype, out_dtype=out_dtype,
                      head_row_tile=head_row_tile)


# --------------------------------------------------------------------------
# Pure-JAX reference for classifiers + head (separable bilinear), using the same
# bf16-rounded operands as the kernel path, intermediates in f32.
# --------------------------------------------------------------------------
def reference_head(f16_map, f32_map, params, interp, compute_dtype=jnp.bfloat16):
    rd = lambda a: a.astype(compute_dtype).astype(jnp.float32)
    f16c = jnp.transpose(f16_map.astype(jnp.float32), (0, 3, 1, 2))
    f32c = jnp.transpose(f32_map.astype(jnp.float32), (0, 3, 1, 2))
    p16 = jnp.einsum("oc,nchw->nohw", rd(params["w16t"]), f16c) \
        + params["b16"].reshape(1, -1, 1, 1)
    p32 = jnp.einsum("oc,nchw->nohw", rd(params["w32t"]), f32c) \
        + params["b32"].reshape(1, -1, 1, 1)
    p32 = rd(p32)                       # head consumes pred32 as a bf16 operand
    up32 = jnp.einsum("Hh,nchw,wW->ncHW", rd(interp["mh2"]), p32, rd(interp["mw2t"]))
    pred = p16 + up32
    return jnp.einsum("Hh,nchw,wW->ncHW", rd(interp["mh16"]), pred, rd(interp["mw16t"]))


if __name__ == "__main__":
    # small deterministic example: N=2, in_channels=3, 64x64 image, 4 classes
    N, CIN, H, W = 2, 3, 64, 64
    C16, C32, COUT = 8, 16, 4
    H16, W16, H32, W32 = H // 16, W // 16, H // 32, W // 32

    key = jax.random.PRNGKey(0)
    k = jax.random.split(key, 9)
    x = jax.random.normal(k[0], (N, CIN, H, W), jnp.float32)

    params = {
        # synthetic backbone (patchify convs)
        "wb16": jax.random.normal(k[1], (16 * 16 * CIN, C16), jnp.float32)
                / np.sqrt(16 * 16 * CIN),
        "bb16": jax.random.normal(k[2], (C16,), jnp.float32) * 0.01,
        "wb32": jax.random.normal(k[3], (2 * 2 * C16, C32), jnp.float32)
                / np.sqrt(2 * 2 * C16),
        "bb32": jax.random.normal(k[4], (C32,), jnp.float32) * 0.01,
        # FCN16 1x1 classifiers: PyTorch Conv2d weight (Cout, Cin, 1, 1) stored (Cout, Cin)
        "w16t": jax.random.normal(k[5], (COUT, C16), jnp.float32) / np.sqrt(C16),
        "b16":  jax.random.normal(k[6], (COUT,), jnp.float32) * 0.01,
        "w32t": jax.random.normal(k[7], (COUT, C32), jnp.float32) / np.sqrt(C32),
        "b32":  jax.random.normal(k[8], (COUT,), jnp.float32) * 0.01,
    }
    interp = make_interp_matrices(H, W, H16, W16, H32, W32, COUT)   # hoisted, built once

    # head_row_tile=32 -> 2 output row tiles per batch element, exercising the tiled,
    # fully-parallel H-step path and the per-channel lane-slab stores.
    out = fcn16_forward(x, params, interp, head_row_tile=32)
    out = jax.block_until_ready(out)
    assert out.shape == (N, COUT, H, W), out.shape

    # correctness check against a pure-JAX separable reference (same bf16-cast operands,
    # f32 intermediates).
    f16_map, f32_map, _, _ = backbone_and_classify(x, params, jnp.bfloat16)
    ref = jax.block_until_ready(reference_head(f16_map, f32_map, params, interp))
    o32 = np.asarray(out.astype(jnp.float32))
    r32 = np.asarray(ref.astype(jnp.float32))
    diff = float(np.max(np.abs(o32 - r32)))
    assert np.allclose(o32, r32, rtol=3e-2, atol=3e-2), diff

    print("KERNEL_OK")
</pallas_src>

<mosaic_0001>
module attributes {stable_mosaic.version = 11 : i64} {
  func.func @_stage_kernel(%arg0: i32, %arg1: i32, %arg2: memref<32x384xbf16, #tpu.memory_space<vmem>>, %arg3: memref<384x8xbf16, #tpu.memory_space<vmem>>, %arg4: memref<1x8xf32, #tpu.memory_space<vmem>>, %arg5: memref<8x4xbf16, #tpu.memory_space<vmem>>, %arg6: memref<1x4xf32, #tpu.memory_space<vmem>>, %arg7: memref<32x8xbf16, #tpu.memory_space<vmem>>, %arg8: memref<32x4xf32, #tpu.memory_space<vmem>>, %arg9: memref<32x8xf32, #tpu.memory_space<vmem>>) attributes {dimension_semantics = [#tpu.dimension_semantics<parallel>, #tpu.dimension_semantics<arbitrary>], iteration_bounds = array<i64: 1, 2>, scalar_prefetch = 0 : i64, scratch_operands = 1 : i64, tpu.core_type = #tpu.core_type<tc>, window_params = [{transform_indices = @transform_0, window_bounds = array<i64: 32, 384>}, {transform_indices = @transform_1, window_bounds = array<i64: 384, 8>}, {pipeline_mode = #tpu.pipeline_mode<synchronous>, transform_indices = @transform_2, window_bounds = array<i64: 1, 8>}, {pipeline_mode = #tpu.pipeline_mode<synchronous>, transform_indices = @transform_3, window_bounds = array<i64: 8, 4>}, {pipeline_mode = #tpu.pipeline_mode<synchronous>, transform_indices = @transform_4, window_bounds = array<i64: 1, 4>}, {transform_indices = @transform_5, window_bounds = array<i64: 32, 8>}, {transform_indices = @transform_6, window_bounds = array<i64: 32, 4>}]} {
    %c0_i32 = arith.constant 0 : i32
    %0 = arith.cmpi eq, %arg1, %c0_i32 : i32
    %1 = arith.extui %0 : i1 to i32
    %c0_i32_0 = arith.constant 0 : i32
    %2 = arith.cmpi ne, %1, %c0_i32_0 : i32
    scf.if %2 {
      %cst_9 = arith.constant 0.000000e+00 : f32
      %12 = vector.broadcast %cst_9 : f32 to vector<32x8xf32>
      %c0_10 = arith.constant 0 : index
      %c0_11 = arith.constant 0 : index
      %13 = vector.load %arg9[%c0_10, %c0_11] : memref<32x8xf32, #tpu.memory_space<vmem>>, vector<32x8xf32>
      tpu.vector_store %arg9[%c0_10, %c0_11], %12 {strides = array<i32>} : memref<32x8xf32, #tpu.memory_space<vmem>>, vector<32x8xf32>,
    } else {
    }
    %c0 = arith.constant 0 : index
    %c0_1 = arith.constant 0 : index
    %3 = vector.load %arg9[%c0, %c0_1] : memref<32x8xf32, #tpu.memory_space<vmem>>, vector<32x8xf32>
    %c0_2 = arith.constant 0 : index
    %c0_3 = arith.constant 0 : index
    %4 = vector.load %arg2[%c0_2, %c0_3] : memref<32x384xbf16, #tpu.memory_space<vmem>>, vector<32x384xbf16>
    %c0_4 = arith.constant 0 : index
    %c0_5 = arith.constant 0 : index
    %5 = vector.load %arg3[%c0_4, %c0_5] : memref<384x8xbf16, #tpu.memory_space<vmem>>, vector<384x8xbf16>
    %cst = arith.constant dense<0.000000e+00> : vector<32x8xf32>
    %6 = tpu.matmul %4, %5, %cst {dimension_numbers = #tpu.dot_dimension_numbers<[1], [0], [0], [1], [0, 0, 1, 1], [], []>} : vector<32x384xbf16>, vector<384x8xbf16>, vector<32x8xf32> -> vector<32x8xf32>
    %7 = arith.addf %3, %6 : vector<32x8xf32>
    %c0_6 = arith.constant 0 : index
    %c0_7 = arith.constant 0 : index
    %8 = vector.load %arg9[%c0_6, %c0_7] : memref<32x8xf32, #tpu.memory_space<vmem>>, vector<32x8xf32>
    tpu.vector_store %arg9[%c0_6, %c0_7], %7 {strides = array<i32>} : memref<32x8xf32, #tpu.memory_space<vmem>>, vector<32x8xf32>,
    %c1_i32 = arith.constant 1 : i32
    %9 = arith.cmpi eq, %arg1, %c1_i32 : i32
    %10 = arith.extui %9 : i1 to i32
    %c0_i32_8 = arith.constant 0 : i32
    %11 = arith.cmpi ne, %10, %c0_i32_8 : i32
    scf.if %11 {
      %c0_9 = arith.constant 0 : index
      %c0_10 = arith.constant 0 : index
      %12 = vector.load %arg9[%c0_9, %c0_10] : memref<32x8xf32, #tpu.memory_space<vmem>>, vector<32x8xf32>
      %c0_11 = arith.constant 0 : index
      %c0_12 = arith.constant 0 : index
      %13 = vector.load %arg4[%c0_11, %c0_12] : memref<1x8xf32, #tpu.memory_space<vmem>>, vector<1x8xf32>
      %14 = vector.broadcast %13 : vector<1x8xf32> to vector<32x8xf32>
      %15 = arith.addf %12, %14 : vector<32x8xf32>
      %cst_13 = arith.constant 0.000000e+00 : f32
      %16 = vector.broadcast %cst_13 : f32 to vector<32x8xf32>
      %17 = arith.maximumf %15, %16 : vector<32x8xf32>
      %18 = arith.truncf %17 : vector<32x8xf32> to vector<32x8xbf16>
      %c0_14 = arith.constant 0 : index
      %c0_15 = arith.constant 0 : index
      %19 = vector.load %arg7[%c0_14, %c0_15] : memref<32x8xbf16, #tpu.memory_space<vmem>>, vector<32x8xbf16>
      tpu.vector_store %arg7[%c0_14, %c0_15], %18 {strides = array<i32>} : memref<32x8xbf16, #tpu.memory_space<vmem>>, vector<32x8xbf16>,
      %20 = arith.truncf %17 : vector<32x8xf32> to vector<32x8xbf16>
      %c0_16 = arith.constant 0 : index
      %c0_17 = arith.constant 0 : index
      %21 = vector.load %arg5[%c0_16, %c0_17] : memref<8x4xbf16, #tpu.memory_space<vmem>>, vector<8x4xbf16>
      %cst_18 = arith.constant dense<0.000000e+00> : vector<32x4xf32>
      %22 = tpu.matmul %20, %21, %cst_18 {dimension_numbers = #tpu.dot_dimension_numbers<[1], [0], [0], [1], [0, 0, 1, 1], [], []>} : vector<32x8xbf16>, vector<8x4xbf16>, vector<32x4xf32> -> vector<32x4xf32>
      %c0_19 = arith.constant 0 : index
      %c0_20 = arith.constant 0 : index
      %23 = vector.load %arg6[%c0_19, %c0_20] : memref<1x4xf32, #tpu.memory_space<vmem>>, vector<1x4xf32>
      %24 = vector.broadcast %23 : vector<1x4xf32> to vector<32x4xf32>
      %25 = arith.addf %22, %24 : vector<32x4xf32>
      %c0_21 = arith.constant 0 : index
      %c0_22 = arith.constant 0 : index
      %26 = vector.load %arg8[%c0_21, %c0_22] : memref<32x4xf32, #tpu.memory_space<vmem>>, vector<32x4xf32>
      tpu.vector_store %arg8[%c0_21, %c0_22], %25 {strides = array<i32>} : memref<32x4xf32, #tpu.memory_space<vmem>>, vector<32x4xf32>,
    } else {
    }
    return
  }
  func.func @transform_0(%arg0: i32, %arg1: i32) -> (i32, i32) {
    %c0_i32 = arith.constant 0 : i32
    return %arg0, %arg1 : i32, i32
  }
  func.func @transform_1(%arg0: i32, %arg1: i32) -> (i32, i32) {
    %c0_i32 = arith.constant 0 : i32
    %c0_i32_0 = arith.constant 0 : i32
    return %arg1, %c0_i32 : i32, i32
  }
  func.func @transform_2(%arg0: i32, %arg1: i32) -> (i32, i32) {
    %c0_i32 = arith.constant 0 : i32
    %c0_i32_0 = arith.constant 0 : i32
    %c0_i32_1 = arith.constant 0 : i32
    return %c0_i32, %c0_i32_0 : i32, i32
  }
  func.func @transform_3(%arg0: i32, %arg1: i32) -> (i32, i32) {
    %c0_i32 = arith.constant 0 : i32
    %c0_i32_0 = arith.constant 0 : i32
    %c0_i32_1 = arith.constant 0 : i32
    return %c0_i32, %c0_i32_0 : i32, i32
  }
  func.func @transform_4(%arg0: i32, %arg1: i32) -> (i32, i32) {
    %c0_i32 = arith.constant 0 : i32
    %c0_i32_0 = arith.constant 0 : i32
    %c0_i32_1 = arith.constant 0 : i32
    return %c0_i32, %c0_i32_0 : i32, i32
  }
  func.func @transform_5(%arg0: i32, %arg1: i32) -> (i32, i32) {
    %c0_i32 = arith.constant 0 : i32
    %c0_i32_0 = arith.constant 0 : i32
    return %arg0, %c0_i32 : i32, i32
  }
  func.func @transform_6(%arg0: i32, %arg1: i32) -> (i32, i32) {
    %c0_i32 = arith.constant 0 : i32
    %c0_i32_0 = arith.constant 0 : i32
    return %arg0, %c0_i32 : i32, i32
  }
}

</mosaic_0001>

<bundles_post_ra>
// kernel: tpu_custom_call.1
= control target key start
LH: loop header
LB: loop body
LE: loop exit
PB: predicated region body
PF: predicated region fallthrough
CT: control target
= control target key end

     0   :  { %s1222_s21 = smov 0   ;;  %s1224_s22 = smov 0   ;;  %s1362_s0 = inlined_call_operand.vmem [shape: bf16[32,768], index: 0, kind: input, shape index: {}]   ;;  %s1363_s1 = inlined_call_operand.vmem [shape: bf16[768,8], index: 1, kind: input, shape index: {}]   ;;  %s1364_s2 = inlined_call_operand.vmem [shape: f32[1,8], index: 2, kind: input, shape index: {}]   ;;  %s1365_s3 = inlined_call_operand.vmem [shape: bf16[8,4], index: 3, kind: input, shape index: {}]   ;;  %s1366_s4 = inlined_call_operand.vmem [shape: f32[1,4], index: 4, kind: input, shape index: {}]   ;;  %s1367_s5 = inlined_call_operand.vmem [shape: bf16[32,8], index: 5, kind: output, shape index: {0}]   ;;  %s1368_s6 = inlined_call_operand.vmem [shape: f32[32,4], index: 6, kind: output, shape index: {1}]  }
   0x1   :  { %s1226_s23 = smov 0   ;;  %s1228_s24 = smov 0  }
   0x2   :  { %s1230_s25 = smov 0  }
   0x3 LB: > { %s26_s26 = sadd.s32 1, %s1180_s24  ;;  %p45_p1 = scmp.ne.s32.totalorder %s1172_s22, %s1168_s21  ;;  %s1184_s25 = sphi %s1230_s25, %s17_s25   ;;  %s1180_s24 = sphi %s1228_s24, %s1372_s24   ;;  %s1176_s23 = sphi %s1226_s23, %s1371_s23   ;;  %s1172_s22 = sphi %s1224_s22, %s1370_s22   ;;  %s1168_s21 = sphi %s1222_s21, %s1369_s21  }
   0x4   : > { %p27_p0 = scmp.ge.s32.totalorder %s26_s26, 2  ;;  %p46_p2 = scmp.eq.s32.totalorder %s1184_s25, 0 }
   0x5   : > { %s38_s28 = sadd.s32 1, %s1172_s22  ;;  %p940_p5 = scmp.ge.s32.totalorder %s1184_s25, 2 }
   0x6   : > { %s1374_s26 = smov (%p27_p0, %s26_s26), 0  ;;  %p47_p3 = por %p46_p2, %p45_p1 }
   0x7   : > { %s34_s27 = ssub.s32 %s1180_s24, %s1374_s26  ;;  %221 = sbr.rel (%p940_p5) target bundleno = 23 (0x17), region = 28 }
   0x8   : > { %p36_p4 = scmp.eq.s32.totalorder %s34_s27, 0 }
   0xa   : > { %s1257_s29 = scalar_select %p36_p4, %s1172_s22, %s38_s28  }
   0xe   : > { %224 = sbr.rel (!%p47_p3) target bundleno = 23 (0x17), region = 32  ;;  %s226_s30 = sand.u32 (%p47_p3), 1, %s1172_s22  }
   0xf   : > { %s998_s7 = smul.u32 (%p47_p3), 12, %s1180_s24 }
  0x10   : > { %s1071_s8 = smul.u32 (%p47_p3), 48, %s226_s30 }
  0x11   : > { %s234_s11 = scalar_lea.vmem (%p47_p3), %s1362_s0, %s998_s7 }
  0x12   : > { %v249_v0 = vld [vmem:[%s234_s11] sm:$0xff] (%p47_p3)  ;;  %v251_v1 = vld [vmem:[%s234_s11 + $0x18] sm:$0xff] (%p47_p3)  ;;  %v253_v2 = vld [vmem:[%s234_s11 + $0x30] sm:$0xff] (%p47_p3)  ;;  %s228_s12 = scalar_lea.vmem (%p47_p3), [#allocation3], %s1071_s8 }
  0x13   : > { %250 = vst [vmem:[%s228_s12] sm:$0xff] (%p47_p3), %v249_v0  ;;  %252 = vst [vmem:[%s228_s12 + $0xc] sm:$0xff] (%p47_p3), %v251_v1  ;;  %v255_v3 = vld [vmem:[%s234_s11 + $0x48] sm:$0xff] (%p47_p3)  ;;  %v944_v5 = vld [vmem:[%s234_s11 + $0x20] sm:$0xf] (%p47_p3) }
  0x14   : > { %254 = vst [vmem:[%s228_s12 + $0x18] sm:$0xff] (%p47_p3), %v253_v2  ;;  %v942_v4 = vld [vmem:[%s234_s11 + $0x8] sm:$0xf] (%p47_p3)  ;;  %256 = vst [vmem:[%s228_s12 + $0x24] sm:$0xff] (%p47_p3), %v255_v3  ;;  %v946_v6 = vld [vmem:[%s234_s11 + $0x38] sm:$0xf] (%p47_p3) }
  0x15   : > { %943 = vst [vmem:[%s228_s12 + $0x8] sm:$0xf] %v942_v4  ;;  %945 = vst [vmem:[%s228_s12 + $0x14] sm:$0xf] %v944_v5  ;;  %v948_v7 = vld [vmem:[%s234_s11 + $0x50] sm:$0xf] }
  0x16   : > { %947 = vst [vmem:[%s228_s12 + $0x20] sm:$0xf] %v946_v6  ;;  %949 = vst [vmem:[%s228_s12 + $0x2c] sm:$0xf] %v948_v7 }
  0x17 PF: > { %p950_p6 = scmp.ge.s32.totalorder %s1184_s25, 1  ;;  %p285_p7 = scmp.lt.s32.totalorder %s1184_s25, 3 }
  0x19   : > { %p286_p8 = pnand %p950_p6, %p285_p7 }
  0x1a   : > { %s292_s13 = sand.u32 (!%p286_p8), 1, %s1168_s21   ;;  %s333_s14 = smul.u32 (!%p286_p8), 48, %s1176_s23 }
  0x1b   : > { %289 = sbr.rel (%p286_p8) target bundleno = 535 (0x217), region = 62  ;;  %p952_p10 = scmp.ne.s32.totalorder (!%p286_p8), %s1176_s23, 0 }
  0x1c   : > { %s1072_s15 = smul.u32 (!%p286_p8), 48, %s292_s13  ;;  %p334_p9 = scmp.lt.s32.totalorder (!%p286_p8), %s333_s14, 95 }
  0x1e   : > { %s1274_s20 = scalar_lea.vmem (!%p286_p8), [#allocation3], %s1072_s15 }
  0x22   : > { %s1376_s14 = smov (!%p334_p9, %s333_s14), 95  ;;  %355 = sbr.rel (%p952_p10) target bundleno = 41 (0x29), region = 70 }
  0x23   : > { %s951_s16 = sshll.u32 %s1376_s14, 2  ;;  %vm356_vm0 = vcmask (!%p952_p10), 64512   ;;  %v1186_v8 = vmov (!%p952_p10), 0.0  }
  0x24   : > { %s1272_s19 = scalar_lea.vmem %s1363_s1, %s951_s16  ;;  %357 = vst.msk [vmem:[#allocation2] sm:$0xff] (!%p952_p10), %vm356_vm0, %v1186_v8  ;;  %358 = vst.msk [vmem:[#allocation2 + $0x8] sm:$0xff] (!%p952_p10), %vm356_vm0, %v1186_v8 }
  0x25   : > { %359 = vst.msk [vmem:[#allocation2 + $0x10] sm:$0xff] (!%p952_p10), %vm356_vm0, %v1186_v8  ;;  %360 = vst.msk [vmem:[#allocation2 + $0x18] sm:$0xff] (!%p952_p10), %vm356_vm0, %v1186_v8 }
  0x29 PF: > { %v1114_v9 = vld [vmem:[%s1272_s19 + $0x40] sm:$0xff]   ;;  %v1117_v12 = vld [vmem:[%s1272_s19 + $0x48] sm:$0xff]   ;;  %v1120_v15 = vld [vmem:[%s1272_s19 + $0x50] sm:$0xff]   ;;  %vm699_vm1 = vcmask 64512   ;;  %p983_p11 = scmp.ne.s32.totalorder %s1176_s23, 1 }
  0x2a   : > { %v1115_v10 = vld [vmem:[%s1272_s19] sm:$0xff]   ;;  %1003 = vmatprep.subr.bf16.mxu0 %v1114_v9  ;;  %v1118_v13 = vld [vmem:[%s1272_s19 + $0x8] sm:$0xff]   ;;  %v1121_v16 = vld [vmem:[%s1272_s19 + $0x10] sm:$0xff]   ;;  %vm762_vm2 = vcmask (!%p983_p11), 1043456   ;;  %vm743_vm3 = vcmask (!%p983_p11), 60416   ;;  %vm815_vm4 = vcmask (!%p983_p11), 31744  }
  0x2b   : > { %v1116_v11 = vld [vmem:[%s1272_s19 + $0x80] sm:$0xff]   ;;  %1004 = vmatpush3.bf16.msra.mxu0 %v1115_v10  ;;  %v1119_v14 = vld [vmem:[%s1272_s19 + $0x88] sm:$0xff]   ;;  %v1122_v17 = vld [vmem:[%s1272_s19 + $0x90] sm:$0xff]  }
  0x2c   : > { %1044 = vmatprep.subr.bf16.mxu1 %v1116_v11  ;;  %1005 = vmatprep.subr.bf16.mxu0 %v1117_v12  ;;  %v1123_v18 = vld [vmem:[%s1272_s19 + $0x58] sm:$0xff]   ;;  %v1126_v21 = vld [vmem:[%s1272_s19 + $0x60] sm:$0xff]   ;;  %v1129_v24 = vld [vmem:[%s1272_s19 + $0x68] sm:$0xff]  }
  0x2d   : > { %1045 = vmatpush3.bf16.msra.mxu1 %v1116_v11  ;;  %v1124_v19 = vld [vmem:[%s1272_s19 + $0x18] sm:$0xff]   ;;  %v1128_v22 = vld [vmem:[%s1272_s19 + $0xa0] sm:$0xff]   ;;  %v1131_v25 = vld [vmem:[%s1272_s19 + $0xa8] sm:$0xff]  }
  0x2e   : > { %1046 = vmatprep.subr.bf16.mxu1 %v1119_v14  ;;  %v1125_v20 = vld [vmem:[%s1272_s19 + $0x98] sm:$0xff]   ;;  %v1127_v23 = vld [vmem:[%s1272_s19 + $0x20] sm:$0xff]   ;;  %v1130_v26 = vld [vmem:[%s1272_s19 + $0x28] sm:$0xff]  }
  0x2f   : > { %1006 = vmatpush3.bf16.msra.mxu0 %v1118_v13  ;;  %v1132_v27 = vld [vmem:[%s1272_s19 + $0x70] sm:$0xff]   ;;  %v1135_v30 = vld [vmem:[%s1272_s19 + $0x78] sm:$0xff]   ;;  %v361_v45 = vld [vmem:[#allocation2] sm:$0xff] }
  0x30   : > { %1007 = vmatprep.subr.bf16.mxu0 %v1120_v15  ;;  %v1133_v28 = vld [vmem:[%s1272_s19 + $0x30] sm:$0xff]   ;;  %v1137_v31 = vld [vmem:[%s1272_s19 + $0xb8] sm:$0xff]   ;;  %v362_v50 = vld [vmem:[#allocation2 + $0x8] sm:$0xff] }
  0x31   : > { %1047 = vmatpush3.bf16.msra.mxu1 %v1119_v14  ;;  %v1134_v29 = vld [vmem:[%s1272_s19 + $0xb0] sm:$0xff]   ;;  %v1136_v34 = vld [vmem:[%s1272_s19 + $0x38] sm:$0xff]   ;;  %v748_v3 = vld [vmem:[%s1365_s3] sm:$0xf] (!%p983_p11) }
  0x32   : > { %1048 = vmatprep.subr.bf16.mxu1 %v1122_v17  ;;  %v1140_v32 = vld [vmem:[%s1274_s20 + $0x4] ss:$12 sps:$4 sm:$0xff]   ;;  %v1141_v33 = vld [vmem:[%s1274_s20 + $0x8] ss:$12 sps:$4 sm:$0xff]   ;;  %v1138_v35 = vld [vmem:[%s1274_s20] ss:$12 sps:$4 sm:$0xff]  }
  0x33   : > { %1008 = vmatpush3.bf16.msra.mxu0 %v1121_v16  ;;  %629 = vmatprep.mubr.bf16.mxu0 %v1140_v32  ;;  %v1143_v36 = vld [vmem:[%s1274_s20 + $0x1c] ss:$12 sps:$4 sm:$0xff]   ;;  %v1142_v37 = vld [vmem:[%s1274_s20 + $0x20] ss:$12 sps:$4 sm:$0xff]   ;;  %v1145_v38 = vld [vmem:[%s1274_s20 + $0x18] ss:$12 sps:$4 sm:$0xff]  }
  0x34   : > { %1009 = vmatprep.subr.bf16.mxu0 %v1123_v18  ;;  %1060 = vmatprep.mubr.bf16.mxu1 %v1141_v33  ;;  %v363_v59 = vld [vmem:[#allocation2 + $0x10] sm:$0xff]  ;;  %v364_v63 = vld [vmem:[#allocation2 + $0x18] sm:$0xff]  ;;  %v764_v6 = vsel (!%p983_p11), %vm762_vm2, %v748_v3, 0  ;;  %v984_v7 = vld [vmem:[%s1364_s2] ss:$0 sm:$0xff] (!%p983_p11) }
  0x35   : > { %1049 = vmatpush3.bf16.msra.mxu1 %v1122_v17 }
  0x36   : > { %1050 = vmatprep.subr.bf16.mxu1 %v1125_v20 }
  0x37   : > { %1010 = vmatpush3.bf16.msra.mxu0 %v1124_v19 }
  0x38   : > { %1011 = vmatprep.subr.bf16.mxu0 %v1126_v21 }
  0x39   : > { %1051 = vmatpush3.bf16.msra.mxu1 %v1125_v20 }
  0x3a   : > { %1052 = vmatprep.subr.bf16.mxu1 %v1128_v22 }
  0x3b   : > { %1012 = vmatpush3.bf16.msra.mxu0 %v1127_v23 }
  0x3c   : > { %1013 = vmatprep.subr.bf16.mxu0 %v1129_v24  ;;  %v989_v24 = vld [vmem:[%s1366_s4] ss:$0 sm:$0xff] (!%p983_p11) }
  0x3d   : > { %1053 = vmatpush3.bf16.msra.mxu1 %v1128_v22 }
  0x3e   : > { %1054 = vmatprep.subr.bf16.mxu1 %v1131_v25 }
  0x3f   : > { %1014 = vmatpush3.bf16.msra.mxu0 %v1130_v26 }
  0x40   : > { %1015 = vmatprep.subr.bf16.mxu0 %v1132_v27 }
  0x41   : > { %1055 = vmatpush3.bf16.msra.mxu1 %v1131_v25 }
  0x42   : > { %1056 = vmatprep.subr.bf16.mxu1 %v1134_v29 }
  0x43   : > { %1016 = vmatpush3.bf16.msra.mxu0 %v1133_v28 }
  0x44   : > { %1017 = vmatprep.subr.bf16.mxu0 %v1135_v30 }
  0x45   : > { %1057 = vmatpush3.bf16.msra.mxu1 %v1134_v29 }
  0x46   : > { %1058 = vmatprep.subr.bf16.mxu1 %v1137_v31 }
  0x47   : > { %1018 = vmatpush3.bf16.msra.mxu0 %v1136_v34 }
  0x48   : > { %1070 = vmatprep.subr.msk.bf16.mxu0 (!%p983_p11), %vm762_vm2, %v748_v3 }
  0x49   : > { %1059 = vmatpush3.bf16.msra.mxu1 %v1137_v31 }
  0x4a   : > { %630 = vmatmul.mubr.bf16.vlgmr.msra.gmra.mrb[0].mxu0 %v1138_v35 }
  0x4b   : > { %637 = vmatprep.mubr.bf16.mxu0 %v1143_v36  ;;  %1065 = vmatpush3.bf16.msra.mxu0 (!%p983_p11), %v764_v6 }
  0x4c   : > { %1061 = vmatmul.mubr.bf16.vlgmr.msra.gmra.mrb[0].mxu1 %v1142_v37 }
  0x52   : > { %638 = vmatmul.mubr.bf16.gmra.mrb[4].mxu0 %v1145_v38 }
 0x11d   : > { %v1019_v39 = vpop.f32.mrb[0].mxu0 }
 0x11e   : > { %v1020_v40 = vpop.f32.mrb[1].mxu0 }
 0x11f   : > { %v1021_v41 = vadd.f32 %v1020_v40, %v1019_v39  ;;  %v1022_v42 = vpop.f32.mrb[2].mxu0  ;;  %v1062_v43 = vpop.f32.mrb[0].mxu1 }
 0x120   : > { %v1023_v44 = vpop.f32.mrb[3].mxu0  ;;  %v680_v46 = vpop.f32.mrb[1].mxu1 }
 0x121   : > { %v1024_v47 = vadd.f32 %v1023_v44, %v1022_v42  ;;  %v681_v48 = vadd.f32 %v1021_v41, %v680_v46  ;;  %v1063_v49 = vpop.f32.mrb[2].mxu1 }
 0x122   : > { %v683_v51 = vpop.f32.mrb[3].mxu1 }
 0x123   : > { %v695_v52 = vadd.f32 %v681_v48, %v361_v45  ;;  %v684_v53 = vadd.f32 %v1024_v47, %v683_v51 }
 0x125   : > { %700 = vst.msk [vmem:[#allocation2] sm:$0xff] %vm699_vm1, %v695_v52  ;;  %v696_v54 = vadd.f32 %v684_v53, %v362_v50  ;;  %v1025_v55 = vpop.f32.mrb[4].mxu0 }
 0x126   : > { %v1026_v56 = vpop.f32.mrb[5].mxu0 }
 0x127   : > { %701 = vst.msk [vmem:[#allocation2 + $0x8] sm:$0xff] %vm699_vm1, %v696_v54  ;;  %v1027_v57 = vadd.f32 %v1026_v56, %v1025_v55  ;;  %v1028_v58 = vpop.f32.mrb[6].mxu0 }
 0x128   : > { %v1029_v60 = vpop.f32.mrb[7].mxu0 }
 0x129   : > { %v689_v61 = vadd.f32 %v1062_v43, %v1027_v57  ;;  %v1030_v62 = vadd.f32 %v1029_v60, %v1028_v58  ;;  %707 = sbr.rel (%p983_p11) target bundleno = 535 (0x217), region = 74 }
 0x12b   : > { %v697_v0 = vadd.f32 %v689_v61, %v363_v59  ;;  %v692_v1 = vadd.f32 %v1063_v49, %v1030_v62 }
 0x12c   : > { %v708_v4 = vld [vmem:[#allocation2] sm:$0xff] (!%p983_p11) }
 0x12d   : > { %702 = vst.msk [vmem:[#allocation2 + $0x10] sm:$0xff] %vm699_vm1, %v697_v0  ;;  %v698_v2 = vadd.f32 %v692_v1, %v364_v63  ;;  %v719_v10 = vadd.f32 (!%p983_p11), %v984_v7, %v708_v4 }
 0x12e   : > { %v709_v5 = vld [vmem:[#allocation2 + $0x8] sm:$0xff] (!%p983_p11) }
 0x12f   : > { %703 = vst.msk [vmem:[#allocation2 + $0x18] sm:$0xff] %vm699_vm1, %v698_v2  ;;  %v720_v11 = vadd.f32 (!%p983_p11), %v984_v7, %v709_v5  ;;  %v723_v14 = vmax.f32 (!%p983_p11), %v719_v10, 0.0 }
 0x131   : > { %v724_v15 = vmax.f32 %v720_v11, 0.0  ;;  %v999_v19 = vpack.c.bf16 %v723_v14, %v723_v14 }
 0x133   : > { %v727_v18 = vpack.c.bf16 %v724_v15, %v723_v14  ;;  %v1000_v20 = vpack.c.bf16 %v724_v15, %v724_v15  ;;  %744 = vst.msk [vmem:[%s1367_s5] sm:$0xf] %vm743_vm3, %v999_v19 }
 0x134   : > { %v710_v8 = vld [vmem:[#allocation2 + $0x10] sm:$0xff] }
 0x135   : > { %v721_v12 = vadd.f32 %v984_v7, %v710_v8  ;;  %745 = vst.msk [vmem:[%s1367_s5 + $0x4] sm:$0xf] %vm743_vm3, %v1000_v20  ;;  %1066 = vmatprep.mubr.msk.bf16.mxu0 %vm699_vm1, %v727_v18 }
 0x136   : > { %v711_v9 = vld [vmem:[#allocation2 + $0x18] sm:$0xff] }
 0x137   : > { %v722_v13 = vadd.f32 %v984_v7, %v711_v9  ;;  %v725_v16 = vmax.f32 %v721_v12, 0.0 }
 0x139   : > { %v726_v17 = vmax.f32 %v722_v13, 0.0  ;;  %v1001_v22 = vpack.c.bf16 %v725_v16, %v725_v16 }
 0x13b   : > { %v728_v21 = vpack.c.bf16 %v726_v17, %v725_v16  ;;  %v1002_v23 = vpack.c.bf16 %v726_v17, %v726_v17  ;;  %746 = vst.msk [vmem:[%s1367_s5 + $0x8] sm:$0xf] %vm743_vm3, %v1001_v22 }
 0x13d   : > { %747 = vst.msk [vmem:[%s1367_s5 + $0xc] sm:$0xf] %vm743_vm3, %v1002_v23  ;;  %1067 = vmatmul.mubr.msk.bf16.vlgmr.msra.gmra.mrb[0].mxu0 %vm699_vm1, %v728_v21 }
 0x210   : > { %v1068_v25 = vpop.f32.mrb[0].mxu0 }
 0x211   : > { %v809_v26 = vadd.f32 %v1068_v25, %v989_v24  ;;  %v800_v27 = vpop.f32.mrb[1].mxu0 }
 0x212   : > { %v801_v28 = vadd.f32 %v989_v24, %v800_v27  ;;  %v1069_v29 = vpop.f32.mrb[2].mxu0 }
 0x213   : > { %818 = vst.msk [vmem:[%s1368_s6 + $0x10] sm:$0xff] %vm815_vm4, %v809_v26  ;;  %v812_v30 = vadd.f32 %v1069_v29, %v989_v24  ;;  %v803_v31 = vpop.f32.mrb[3].mxu0 }
 0x214   : > { %816 = vst.msk [vmem:[%s1368_s6] sm:$0xff] %vm815_vm4, %v801_v28  ;;  %v804_v32 = vadd.f32 %v989_v24, %v803_v31 }
 0x215   : > { %819 = vst.msk [vmem:[%s1368_s6 + $0x18] sm:$0xff] %vm815_vm4, %v812_v30 }
 0x216   : > { %817 = vst.msk [vmem:[%s1368_s6 + $0x8] sm:$0xff] %vm815_vm4, %v804_v32 }
 0x217 PF: > { %s17_s25 = sadd.s32 1, %s1184_s25   ;;  %s1369_s21 = smov %s1172_s22 }
 0x218   : > { %p14_p12 = scmp.ge.s32.totalorder %s17_s25, 4   ;;  %s1370_s22 = smov %s1257_s29 }
 0x219   : > { %s1371_s23 = smov %s1180_s24  ;;  %s1372_s24 = smov %s1374_s26 }
 0x21a   :  { %16 = sbr.rel (!%p14_p12) target bundleno = 3 (0x3), region = 130 }

</bundles_post_ra>
